<compile_context>
chip_gen: v7x
topology: tpu7x:2x2x1
jax: 0.10.0
libtpu: 0.0.40
codegen_flags: <defaults>
</compile_context>

<pallas_src>
import functools
import math

import jax
import jax.numpy as jnp
from jax.experimental import pallas as pl
from jax.experimental.pallas import tpu as pltpu


NEG_INF = -1e30                     # mask value (safe in f32; exp underflows to 0)


# ----------------------------- helpers -----------------------------

def _round_up(x, m):
    return (x + m - 1) // m * m


@functools.lru_cache(maxsize=None)
def _vmem_limit_bytes():
    """Generation-aware scoped-VMEM request (3/4 of physical, capped, safe fallback)."""
    cap = 64 * 1024 * 1024
    try:
        info = pltpu.get_tpu_info()
        cap = int(getattr(info, "vmem_capacity_bytes", cap))
    except Exception:
        pass
    return int(min(cap * 3 // 4, 96 * 1024 * 1024))


def _tile_and_pad(dim, cap, align):
    """Pick the tile first (<= cap, multiple of align), then pad dim up to a multiple.

    Avoids the degenerate 8-row / 128-col tiles that appear when dim is not divisible
    by a large power of two (pad rows/cols are sliced off by the wrappers).
    """
    t = min(cap, _round_up(dim, align))
    padded = _round_up(dim, t)
    return t, padded


def _row_tile(M, cap=512, ensure_two_blocks=False):
    tm, Mp = _tile_and_pad(M, cap, 16)
    if ensure_two_blocks and Mp // tm < 2 and tm >= 32:
        tm //= 2                       # keep both v7x TensorCores busy
        Mp = _round_up(M, tm)
    return tm, Mp


def _gelu_new(x):
    # GPT2 "gelu_new" (tanh approximation), computed in f32.
    c = math.sqrt(2.0 / math.pi)
    return 0.5 * x * (1.0 + jnp.tanh(c * (x + 0.044715 * x * x * x)))


# ----------------------------- Pallas kernels -----------------------------

def _matmul_kernel(*refs, activation, has_residual):
    """Tiled matmul with K-axis reduction grid.

    refs = (x, w, bias[, residual], out, acc_scratch)
    x: (tm, tk) bf16, w: (tk, tn) bf16, bias: (1, tn) f32,
    residual: (tm, tn) f32, out: (tm, tn), acc: (tm, tn) f32.
    """
    if has_residual:
        x_ref, w_ref, bias_ref, res_ref, o_ref, acc_ref = refs
    else:
        x_ref, w_ref, bias_ref, o_ref, acc_ref = refs
        res_ref = None

    k = pl.program_id(2)

    @pl.when(k == 0)
    def _():
        acc_ref[...] = jnp.zeros_like(acc_ref)

    acc_ref[...] += jnp.dot(x_ref[...], w_ref[...],
                            preferred_element_type=jnp.float32)

    @pl.when(k == pl.num_programs(2) - 1)
    def _():
        y = acc_ref[...] + bias_ref[...]          # bias added exactly once
        if activation == "gelu":
            y = _gelu_new(y)
        if res_ref is not None:
            y = y + res_ref[...]
        o_ref[...] = y.astype(o_ref.dtype)


def _ln_matmul_kernel(x_ref, g_ref, b_ref, w_ref, bias_ref, o_ref, xn_ref, *,
                      activation, eps=1e-5):
    """Fused LayerNorm + matmul (+ optional gelu).

    LN statistics are computed ONCE per row block (j == 0) into a bf16 VMEM scratch
    and re-used across all output-N tiles (N axis is 'arbitrary', so scratch reuse
    is safe even with megacore sharding of the row axis).
    """
    @pl.when(pl.program_id(1) == 0)
    def _():
        x = x_ref[...]                                        # (tm, K) f32
        mu = jnp.mean(x, axis=-1, keepdims=True)
        xc = x - mu
        var = jnp.mean(xc * xc, axis=-1, keepdims=True)
        xn = xc * jax.lax.rsqrt(var + eps) * g_ref[...] + b_ref[...]
        xn_ref[...] = xn.astype(jnp.bfloat16)

    y = jnp.dot(xn_ref[...], w_ref[...],
                preferred_element_type=jnp.float32) + bias_ref[...]
    if activation == "gelu":
        y = _gelu_new(y)
    o_ref[...] = y.astype(o_ref.dtype)


def _ln_head_logsoftmax_kernel(x_ref, g_ref, b_ref, w_ref, bias_ref, o_ref,
                               *, eps=1e-5):
    """Fused final-LN + ctc_head matmul + log_softmax (vocab resident, lane padded)."""
    x = x_ref[...]                                            # (tm, H) f32
    mu = jnp.mean(x, axis=-1, keepdims=True)
    xc = x - mu
    var = jnp.mean(xc * xc, axis=-1, keepdims=True)
    xn = xc * jax.lax.rsqrt(var + eps) * g_ref[...] + b_ref[...]
    logits = jnp.dot(xn.astype(jnp.bfloat16), w_ref[...],
                     preferred_element_type=jnp.float32) + bias_ref[...]
    m = jnp.max(logits, axis=-1, keepdims=True)
    z = logits - m
    lse = jnp.log(jnp.sum(jnp.exp(z), axis=-1, keepdims=True))
    o_ref[...] = z - lse


def _flash_attn_kernel(q_ref, k_ref, v_ref, o_ref, m_sc, l_sc, acc_sc, *, tq, tkv):
    """Flash-style causal attention for one (batch*head, q-block, kv-block) point.

    q is already pre-scaled by 1/sqrt(hd) (folded into the QKV weights). The K/V
    index_map clamps the kv block index to the diagonal, so above-diagonal steps do
    no compute AND no fresh DMA (resident tile re-used).
    """
    qi = pl.program_id(1)
    ki = pl.program_id(2)

    @pl.when(ki == 0)
    def _():
        m_sc[...] = jnp.full_like(m_sc, NEG_INF)
        l_sc[...] = jnp.zeros_like(l_sc)
        acc_sc[...] = jnp.zeros_like(acc_sc)

    @pl.when(ki <= qi)                                   # below/at the causal diagonal
    def _():
        s = jax.lax.dot_general(q_ref[...], k_ref[...], (((1,), (1,)), ((), ())),
                                preferred_element_type=jnp.float32)
        # single predicated mask: diagonal blocks get the local causal mask,
        # fully-visible blocks (ki < qi) pass through unmasked.
        row = jax.lax.broadcasted_iota(jnp.int32, (tq, tkv), 0)
        col = jax.lax.broadcasted_iota(jnp.int32, (tq, tkv), 1)
        s = jnp.where(jnp.logical_or(col <= row, ki < qi), s, NEG_INF)

        m_prev = m_sc[...]
        m_new = jnp.maximum(m_prev, jnp.max(s, axis=-1, keepdims=True))
        alpha = jnp.exp(m_prev - m_new)
        p = jnp.exp(s - m_new)
        l_sc[...] = alpha * l_sc[...] + jnp.sum(p, axis=-1, keepdims=True)
        acc_sc[...] = alpha * acc_sc[...] + jax.lax.dot_general(
            p.astype(jnp.bfloat16), v_ref[...], (((1,), (0,)), ((), ())),
            preferred_element_type=jnp.float32)
        m_sc[...] = m_new

    @pl.when(ki == pl.num_programs(2) - 1)
    def _():
        inv_l = pl.reciprocal(l_sc[...], approx=True)    # EUP slot, ~free
        o_ref[...] = (acc_sc[...] * inv_l).astype(o_ref.dtype)


# ----------------------------- kernel wrappers -----------------------------

def tiled_matmul(x, w, b, *, activation=None, residual=None, out_dtype=jnp.float32):
    """(M,K) @ (K,N) + b [+ gelu] [+ residual], tiled over (M, N, K)."""
    M, K = x.shape
    N = w.shape[1]

    tm, Mp = _row_tile(M, cap=512)
    tn, Np = _tile_and_pad(N, 512, 128)
    tk, Kp = _tile_and_pad(K, 1024, 128)

    xp = jnp.pad(x, ((0, Mp - M), (0, Kp - K))).astype(jnp.bfloat16)
    wp = jnp.pad(w, ((0, Kp - K), (0, Np - N))).astype(jnp.bfloat16)
    bp = jnp.pad(b, (0, Np - N)).reshape(1, Np).astype(jnp.float32)

    in_specs = [
        pl.BlockSpec((tm, tk), lambda i, j, k: (i, k)),
        pl.BlockSpec((tk, tn), lambda i, j, k: (k, j)),
        pl.BlockSpec((1, tn), lambda i, j, k: (0, j)),
    ]
    inputs = [xp, wp, bp]
    if residual is not None:
        rp = jnp.pad(residual, ((0, Mp - M), (0, Np - N))).astype(jnp.float32)
        in_specs.append(pl.BlockSpec((tm, tn), lambda i, j, k: (i, j)))
        inputs.append(rp)

    out = pl.pallas_call(
        functools.partial(_matmul_kernel, activation=activation,
                          has_residual=residual is not None),
        out_shape=jax.ShapeDtypeStruct((Mp, Np), out_dtype),
        grid_spec=pltpu.PrefetchScalarGridSpec(
            num_scalar_prefetch=0,
            grid=(Mp // tm, Np // tn, Kp // tk),
            in_specs=in_specs,
            out_specs=pl.BlockSpec((tm, tn), lambda i, j, k: (i, j)),
            scratch_shapes=[pltpu.VMEM((tm, tn), jnp.float32)],
        ),
        compiler_params=pltpu.CompilerParams(
            dimension_semantics=("parallel", "parallel", "arbitrary"),
            vmem_limit_bytes=_vmem_limit_bytes()),
    )(*inputs)

    if Mp != M or Np != N:
        out = out[:M, :N]
    return out


def fused_ln_matmul(x, gamma, beta, w, b, *, activation=None, out_dtype=jnp.float32):
    """LayerNorm(x) @ w + b [+ gelu]; LN feature dim (hidden) stays resident."""
    M, K = x.shape
    N = w.shape[1]

    tm, Mp = _row_tile(M, cap=512, ensure_two_blocks=True)
    tn, Np = _tile_and_pad(N, 512, 128)

    xp = jnp.pad(x, ((0, Mp - M), (0, 0))).astype(jnp.float32)
    wp = jnp.pad(w, ((0, 0), (0, Np - N))).astype(jnp.bfloat16)
    bp = jnp.pad(b, (0, Np - N)).reshape(1, Np).astype(jnp.float32)
    g2 = gamma.reshape(1, K).astype(jnp.float32)
    be2 = beta.reshape(1, K).astype(jnp.float32)

    out = pl.pallas_call(
        functools.partial(_ln_matmul_kernel, activation=activation),
        out_shape=jax.ShapeDtypeStruct((Mp, Np), out_dtype),
        grid_spec=pltpu.PrefetchScalarGridSpec(
            num_scalar_prefetch=0,
            grid=(Mp // tm, Np // tn),
            in_specs=[
                pl.BlockSpec((tm, K), lambda i, j: (i, 0)),
                pl.BlockSpec((1, K), lambda i, j: (0, 0)),
                pl.BlockSpec((1, K), lambda i, j: (0, 0)),
                pl.BlockSpec((K, tn), lambda i, j: (0, j)),
                pl.BlockSpec((1, tn), lambda i, j: (0, j)),
            ],
            out_specs=pl.BlockSpec((tm, tn), lambda i, j: (i, j)),
            scratch_shapes=[pltpu.VMEM((tm, K), jnp.bfloat16)],   # normalized x cache
        ),
        compiler_params=pltpu.CompilerParams(
            # N axis is 'arbitrary' so the per-row LN scratch (computed at j==0)
            # is guaranteed to be seen first on every core.
            dimension_semantics=("parallel", "arbitrary"),
            vmem_limit_bytes=_vmem_limit_bytes()),
    )(xp, g2, be2, wp, bp)

    if Mp != M or Np != N:
        out = out[:M, :N]
    return out


def fused_ln_head_logsoftmax(x, gamma, beta, w, b):
    """final LN + ctc_head + log_softmax. Vocab padded to 128 lanes, pads masked."""
    M, K = x.shape
    V = w.shape[1]
    Vp = _round_up(V, 128)

    # Row tile adapted to the VMEM budget (resident weight slab + output block).
    budget = int(_vmem_limit_bytes() * 0.7)
    tm = min(512, _round_up(M, 16))

    def _est(t):
        return (2 * t * Vp * 4      # double-buffered f32 output block
                + 2 * K * Vp * 2    # bf16 weight slab (+ buffering headroom)
                + 2 * t * K * 4     # double-buffered f32 x block
                + 2 * t * Vp * 4)   # exp / softmax temporaries
    while tm > 16 and _est(tm) > budget:
        tm //= 2
    Mp = _round_up(M, tm)
    if Mp // tm < 2 and tm >= 32:       # give both v7x TensorCores a row block
        tm //= 2
        Mp = _round_up(M, tm)
    # TODO(synk): for vocabularies where even tm=16 exceeds the budget, add an
    #             N-tiled two-pass (running max / LSE) softmax path.

    xp = jnp.pad(x, ((0, Mp - M), (0, 0))).astype(jnp.float32)
    wp = jnp.pad(w, ((0, 0), (0, Vp - V))).astype(jnp.bfloat16)
    bp = jnp.pad(b.astype(jnp.float32), (0, Vp - V),
                 constant_values=NEG_INF).reshape(1, Vp)
    g2 = gamma.reshape(1, K).astype(jnp.float32)
    be2 = beta.reshape(1, K).astype(jnp.float32)

    out = pl.pallas_call(
        _ln_head_logsoftmax_kernel,
        out_shape=jax.ShapeDtypeStruct((Mp, Vp), jnp.float32),
        grid_spec=pltpu.PrefetchScalarGridSpec(
            num_scalar_prefetch=0,
            grid=(Mp // tm,),
            in_specs=[
                pl.BlockSpec((tm, K), lambda i: (i, 0)),
                pl.BlockSpec((1, K), lambda i: (0, 0)),
                pl.BlockSpec((1, K), lambda i: (0, 0)),
                pl.BlockSpec((K, Vp), lambda i: (0, 0)),
                pl.BlockSpec((1, Vp), lambda i: (0, 0)),
            ],
            out_specs=pl.BlockSpec((tm, Vp), lambda i: (i, 0)),
        ),
        compiler_params=pltpu.CompilerParams(
            dimension_semantics=("parallel",),
            vmem_limit_bytes=_vmem_limit_bytes()),
    )(xp, g2, be2, wp, bp)
    return out[:M, :V]


def flash_causal_attention(q, k, v):
    """q, k, v: (B*nH, T, hd) bf16 (q pre-scaled by 1/sqrt(hd)). Returns bf16."""
    BH, T, hd = q.shape
    tt = min(128, _round_up(T, 8))
    Tp = _round_up(T, tt)

    if Tp != T:
        pad = ((0, 0), (0, Tp - T), (0, 0))
        q = jnp.pad(q, pad)
        k = jnp.pad(k, pad)
        v = jnp.pad(v, pad)

    # K/V block index is clamped to the diagonal: above-diagonal grid points re-use
    # the already-resident (qi) tile, so no HBM->VMEM DMA is issued for skipped work.
    kv_index = lambda b, qi, ki: (b, jnp.minimum(ki, qi), 0)

    out = pl.pallas_call(
        functools.partial(_flash_attn_kernel, tq=tt, tkv=tt),
        out_shape=jax.ShapeDtypeStruct((BH, Tp, hd), jnp.bfloat16),
        grid_spec=pltpu.PrefetchScalarGridSpec(
            num_scalar_prefetch=0,
            grid=(BH, Tp // tt, Tp // tt),
            in_specs=[
                pl.BlockSpec((None, tt, hd), lambda b, qi, ki: (b, qi, 0)),
                pl.BlockSpec((None, tt, hd), kv_index),
                pl.BlockSpec((None, tt, hd), kv_index),
            ],
            out_specs=pl.BlockSpec((None, tt, hd), lambda b, qi, ki: (b, qi, 0)),
            scratch_shapes=[
                pltpu.VMEM((tt, 1), jnp.float32),     # running max m
                pltpu.VMEM((tt, 1), jnp.float32),     # running denom l
                pltpu.VMEM((tt, hd), jnp.float32),    # output accumulator
            ],
        ),
        compiler_params=pltpu.CompilerParams(
            dimension_semantics=("parallel", "parallel", "arbitrary"),
            vmem_limit_bytes=_vmem_limit_bytes()),
    )(q, k, v)

    if Tp != T:
        out = out[:, :T, :]
    return out


# ----------------------------- model (glue in JAX) -----------------------------

def init_params(key, input_size, hidden, vocab, n_layer, n_head, max_pos):
    std = 0.02
    keys = jax.random.split(key, 4 + n_layer)
    params = {
        "in_proj_w": jax.random.normal(keys[0], (input_size, hidden), jnp.float32) * std,
        "in_proj_b": jnp.zeros((hidden,), jnp.float32),
        "wpe": jax.random.normal(keys[1], (max_pos, hidden), jnp.float32) * std,
        "ctc_w": jax.random.normal(keys[2], (hidden, vocab), jnp.float32) * std,
        "ctc_b": jnp.zeros((vocab,), jnp.float32),
        "lnf_g": jnp.ones((hidden,), jnp.float32),
        "lnf_b": jnp.zeros((hidden,), jnp.float32),
        "layers": [],
    }
    for i in range(n_layer):
        lk = jax.random.split(keys[4 + i], 4)
        params["layers"].append(dict(
            ln1_g=jnp.ones((hidden,), jnp.float32),
            ln1_b=jnp.zeros((hidden,), jnp.float32),
            attn_w=jax.random.normal(lk[0], (hidden, 3 * hidden), jnp.float32) * std,
            attn_b=jnp.zeros((3 * hidden,), jnp.float32),
            attn_proj_w=jax.random.normal(lk[1], (hidden, hidden), jnp.float32) * std,
            attn_proj_b=jnp.zeros((hidden,), jnp.float32),
            ln2_g=jnp.ones((hidden,), jnp.float32),
            ln2_b=jnp.zeros((hidden,), jnp.float32),
            fc_w=jax.random.normal(lk[2], (hidden, 4 * hidden), jnp.float32) * std,
            fc_b=jnp.zeros((4 * hidden,), jnp.float32),
            proj_w=jax.random.normal(lk[3], (4 * hidden, hidden), jnp.float32) * std,
            proj_b=jnp.zeros((hidden,), jnp.float32),
        ))
    return params


def hgrn_asr_forward(params, input_ids, n_head):
    """input_ids: (B, T, input_size) float32 features. Returns (B, T, vocab) log-probs."""
    B, T, F = input_ids.shape
    H = params["in_proj_w"].shape[1]
    hd = H // n_head
    scale = 1.0 / math.sqrt(hd)

    # input_projection
    h = tiled_matmul(input_ids.reshape(B * T, F),
                     params["in_proj_w"], params["in_proj_b"])          # (B*T, H) f32
    # GPT2 with inputs_embeds: add positional embeddings (dropout is a no-op in eval)
    h = h.reshape(B, T, H) + params["wpe"][:T][None, :, :]

    for layer in params["layers"]:
        h2d = h.reshape(B * T, H)

        # ---- attention sub-block: fused LN1 + QKV projection ----
        # 1/sqrt(hd) folded into the q columns of the QKV weights/bias (free, done once;
        # removes the per-kv-step rescale inside the attention kernel).
        attn_w = layer["attn_w"].at[:, :H].multiply(scale)
        attn_b = layer["attn_b"].at[:H].multiply(scale)
        qkv = fused_ln_matmul(h2d, layer["ln1_g"], layer["ln1_b"],
                              attn_w, attn_b, out_dtype=jnp.bfloat16)   # (B*T, 3H) bf16
        qkv = qkv.reshape(B, T, 3, n_head, hd)
        q = jnp.transpose(qkv[:, :, 0], (0, 2, 1, 3)).reshape(B * n_head, T, hd)
        k = jnp.transpose(qkv[:, :, 1], (0, 2, 1, 3)).reshape(B * n_head, T, hd)
        v = jnp.transpose(qkv[:, :, 2], (0, 2, 1, 3)).reshape(B * n_head, T, hd)
        a = flash_causal_attention(q, k, v)                             # (B*nH, T, hd) bf16
        a = jnp.transpose(a.reshape(B, n_head, T, hd), (0, 2, 1, 3)).reshape(B * T, H)
        # attention output projection + residual (fused)
        h = tiled_matmul(a, layer["attn_proj_w"], layer["attn_proj_b"],
                         residual=h2d).reshape(B, T, H)

        # ---- MLP sub-block: fused LN2 + FC + gelu; then proj + residual (fused) ----
        h2d = h.reshape(B * T, H)
        m = fused_ln_matmul(h2d, layer["ln2_g"], layer["ln2_b"],
                            layer["fc_w"], layer["fc_b"],
                            activation="gelu", out_dtype=jnp.bfloat16)  # (B*T, 4H) bf16
        h = tiled_matmul(m, layer["proj_w"], layer["proj_b"],
                         residual=h2d).reshape(B, T, H)

    # ---- fused final LN + ctc_head + log_softmax ----
    log_probs = fused_ln_head_logsoftmax(h.reshape(B * T, H),
                                         params["lnf_g"], params["lnf_b"],
                                         params["ctc_w"], params["ctc_b"])
    V = log_probs.shape[-1]
    return log_probs.reshape(B, T, V)


# TODO(synk): beam-search / greedy CTC decoding (ParallelBeamSearchDecoder.decode) is
# host-side post-processing over python lists; not translated to a Pallas kernel.


if __name__ == "__main__":
    # small, forward-consistent shapes
    B, T = 2, 8
    INPUT_SIZE = 16
    HIDDEN = 32
    N_HEAD = 4
    N_LAYER = 2
    VOCAB = 50
    MAX_POS = 64

    key = jax.random.PRNGKey(0)
    k_param, k_in = jax.random.split(key)
    params = init_params(k_param, INPUT_SIZE, HIDDEN, VOCAB, N_LAYER, N_HEAD, MAX_POS)
    input_ids = jax.random.normal(k_in, (B, T, INPUT_SIZE), jnp.float32)

    log_probs = hgrn_asr_forward(params, input_ids, N_HEAD)
    log_probs = jax.block_until_ready(log_probs)

    assert log_probs.shape == (B, T, VOCAB)
    # rows of a log-softmax must sum (in prob space) to 1
    assert jnp.allclose(jnp.sum(jnp.exp(log_probs), axis=-1), 1.0, atol=1e-4)
    print("KERNEL_OK")
</pallas_src>

<mosaic_0001>
module attributes {stable_mosaic.version = 11 : i64} {
  func.func @_matmul_kernel(%arg0: i32, %arg1: i32, %arg2: i32, %arg3: memref<16x128xbf16, #tpu.memory_space<vmem>>, %arg4: memref<128x128xbf16, #tpu.memory_space<vmem>>, %arg5: memref<1x128xf32, #tpu.memory_space<vmem>>, %arg6: memref<16x128xf32, #tpu.memory_space<vmem>>, %arg7: memref<16x128xf32, #tpu.memory_space<vmem>>) attributes {dimension_semantics = [#tpu.dimension_semantics<parallel>, #tpu.dimension_semantics<parallel>, #tpu.dimension_semantics<arbitrary>], iteration_bounds = array<i64: 1, 1, 1>, scalar_prefetch = 0 : i64, scratch_operands = 1 : i64, tpu.core_type = #tpu.core_type<tc>, window_params = [{transform_indices = @transform_0, window_bounds = array<i64: 16, 128>}, {transform_indices = @transform_1, window_bounds = array<i64: 128, 128>}, {transform_indices = @transform_2, window_bounds = array<i64: 1, 128>}, {transform_indices = @transform_3, window_bounds = array<i64: 16, 128>}]} {
    %c0_i32 = arith.constant 0 : i32
    %0 = arith.cmpi eq, %arg2, %c0_i32 : i32
    %1 = arith.extui %0 : i1 to i32
    %c0_i32_0 = arith.constant 0 : i32
    %2 = arith.cmpi ne, %1, %c0_i32_0 : i32
    scf.if %2 {
      %cst_10 = arith.constant 0.000000e+00 : f32
      %12 = vector.broadcast %cst_10 : f32 to vector<16x128xf32>
      %c0_11 = arith.constant 0 : index
      %c0_12 = arith.constant 0 : index
      %13 = vector.load %arg7[%c0_11, %c0_12] : memref<16x128xf32, #tpu.memory_space<vmem>>, vector<16x128xf32>
      tpu.vector_store %arg7[%c0_11, %c0_12], %12 {strides = array<i32>} : memref<16x128xf32, #tpu.memory_space<vmem>>, vector<16x128xf32>,
    } else {
    }
    %c0 = arith.constant 0 : index
    %c0_1 = arith.constant 0 : index
    %3 = vector.load %arg7[%c0, %c0_1] : memref<16x128xf32, #tpu.memory_space<vmem>>, vector<16x128xf32>
    %c0_2 = arith.constant 0 : index
    %c0_3 = arith.constant 0 : index
    %4 = vector.load %arg3[%c0_2, %c0_3] : memref<16x128xbf16, #tpu.memory_space<vmem>>, vector<16x128xbf16>
    %c0_4 = arith.constant 0 : index
    %c0_5 = arith.constant 0 : index
    %5 = vector.load %arg4[%c0_4, %c0_5] : memref<128x128xbf16, #tpu.memory_space<vmem>>, vector<128x128xbf16>
    %cst = arith.constant dense<0.000000e+00> : vector<16x128xf32>
    %6 = tpu.matmul %4, %5, %cst {dimension_numbers = #tpu.dot_dimension_numbers<[1], [0], [0], [1], [0, 0, 1, 1], [], []>} : vector<16x128xbf16>, vector<128x128xbf16>, vector<16x128xf32> -> vector<16x128xf32>
    %7 = arith.addf %3, %6 : vector<16x128xf32>
    %c0_6 = arith.constant 0 : index
    %c0_7 = arith.constant 0 : index
    %8 = vector.load %arg7[%c0_6, %c0_7] : memref<16x128xf32, #tpu.memory_space<vmem>>, vector<16x128xf32>
    tpu.vector_store %arg7[%c0_6, %c0_7], %7 {strides = array<i32>} : memref<16x128xf32, #tpu.memory_space<vmem>>, vector<16x128xf32>,
    %c0_i32_8 = arith.constant 0 : i32
    %9 = arith.cmpi eq, %arg2, %c0_i32_8 : i32
    %10 = arith.extui %9 : i1 to i32
    %c0_i32_9 = arith.constant 0 : i32
    %11 = arith.cmpi ne, %10, %c0_i32_9 : i32
    scf.if %11 {
      %c0_10 = arith.constant 0 : index
      %c0_11 = arith.constant 0 : index
      %12 = vector.load %arg7[%c0_10, %c0_11] : memref<16x128xf32, #tpu.memory_space<vmem>>, vector<16x128xf32>
      %c0_12 = arith.constant 0 : index
      %c0_13 = arith.constant 0 : index
      %13 = vector.load %arg5[%c0_12, %c0_13] : memref<1x128xf32, #tpu.memory_space<vmem>>, vector<1x128xf32>
      %14 = vector.broadcast %13 : vector<1x128xf32> to vector<16x128xf32>
      %15 = arith.addf %12, %14 : vector<16x128xf32>
      %c0_14 = arith.constant 0 : index
      %c0_15 = arith.constant 0 : index
      %16 = vector.load %arg6[%c0_14, %c0_15] : memref<16x128xf32, #tpu.memory_space<vmem>>, vector<16x128xf32>
      tpu.vector_store %arg6[%c0_14, %c0_15], %15 {strides = array<i32>} : memref<16x128xf32, #tpu.memory_space<vmem>>, vector<16x128xf32>,
    } else {
    }
    return
  }
  func.func @transform_0(%arg0: i32, %arg1: i32, %arg2: i32) -> (i32, i32) {
    %c0_i32 = arith.constant 0 : i32
    return %arg0, %arg2 : i32, i32
  }
  func.func @transform_1(%arg0: i32, %arg1: i32, %arg2: i32) -> (i32, i32) {
    %c0_i32 = arith.constant 0 : i32
    return %arg2, %arg1 : i32, i32
  }
  func.func @transform_2(%arg0: i32, %arg1: i32, %arg2: i32) -> (i32, i32) {
    %c0_i32 = arith.constant 0 : i32
    %c0_i32_0 = arith.constant 0 : i32
    return %c0_i32, %arg1 : i32, i32
  }
  func.func @transform_3(%arg0: i32, %arg1: i32, %arg2: i32) -> (i32, i32) {
    %c0_i32 = arith.constant 0 : i32
    return %arg0, %arg1 : i32, i32
  }
}

</mosaic_0001>

<bundles_post_ra>
// kernel: tpu_custom_call.1
= control target key start
LH: loop header
LB: loop body
LE: loop exit
PB: predicated region body
PF: predicated region fallthrough
CT: control target
= control target key end

     0   :  { %8 = vsyncpa [#allocation4], 0  ;;  %s400_s0 = inlined_call_operand.hbm [shape: bf16[16,128], index: 0, kind: input, shape index: {}]   ;;  %s401_s1 = inlined_call_operand.hbm [shape: bf16[128,128], index: 1, kind: input, shape index: {}]   ;;  %s402_s2 = inlined_call_operand.vmem [shape: f32[1,128], index: 2, kind: input, shape index: {}]   ;;  %s403_s3 = inlined_call_operand.hbm [shape: f32[16,128], index: 3, kind: output, shape index: {}]  }
   0x1   :  { %9 = vsyncpa [#allocation7], 0 }
   0x2   :  { %10 = vsyncpa [#allocation5], 0  ;;  %s332_s12 = smov [#allocation3]   ;;  %s260_s16 = scalar_lea.hbm %s400_s0, 128 }
   0x3   :  { %s16_s13 = sshll.u32 %s332_s12, 4  ;;  %p261_p0 = scmp.ne.s32.totalorder %s400_s0, %s260_s16  ;;  %s17_s13 = int_to_ptr.vmem [resolvable:$true] %s16_s13 }
   0x4   :  { %p264_p1 = scmp.lt.u32.totalorder %s260_s16, %s400_s0 }
   0x6   :  { %p266_p2 = pnand %p264_p1, %p261_p0 }
   0x8   :  { %269 = shalt.err (!%p266_p2)
}
   0x9   :  { %s270_s21 = scalar_lea.vmem %s17_s13, 128  ;;  %p275_p4 = scmp.lt.s32.totalorder %s17_s13, %s17_s13 }
   0xa   :  { %p271_p3 = scmp.ne.s32.totalorder %s17_s13, %s270_s21  ;;  %p276_p5 = scmp.lt.s32.totalorder %s270_s21, %s270_s21 }
   0xc   :  { %p277_p6 = por %p276_p5, %p275_p4 }
   0xe   :  { %p278_p7 = pnand %p277_p6, %p271_p3 }
  0x10   :  { %281 = shalt.err (!%p278_p7)
}
  0x11   :  { %s333_s22 = smov 64   ;;  %s334_s23 = smov 4  }
  0x12   :  { %22 = dma.hbm_to_vmem [thread:$0]  %s400_s0, 128, %s17_s13, [#allocation4], %s333_s22, %s333_s22, %s334_s23  }
  0x13   :  { %s335_s26 = smov [#allocation6]   ;;  %s282_s30 = scalar_lea.hbm %s401_s1, 1024 }
  0x14   :  { %s28_s27 = sshll.u32 %s335_s26, 4  ;;  %p283_p8 = scmp.ne.s32.totalorder %s401_s1, %s282_s30  ;;  %s29_s27 = int_to_ptr.vmem [resolvable:$true] %s28_s27 }
  0x15   :  { %p286_p9 = scmp.lt.u32.totalorder %s282_s30, %s401_s1 }
  0x17   :  { %p288_p10 = pnand %p286_p9, %p283_p8 }
  0x19   :  { %291 = shalt.err (!%p288_p10)
}
  0x1a   :  { %s292_s8 = scalar_lea.vmem %s29_s27, 1024  ;;  %p297_p12 = scmp.lt.s32.totalorder %s29_s27, %s29_s27 }
  0x1b   :  { %p293_p11 = scmp.ne.s32.totalorder %s29_s27, %s292_s8  ;;  %p298_p13 = scmp.lt.s32.totalorder %s292_s8, %s292_s8 }
  0x1d   :  { %p299_p0 = por %p298_p13, %p297_p12 }
  0x1f   :  { %p300_p1 = pnand %p299_p0, %p293_p11 }
  0x21   :  { %303 = shalt.err (!%p300_p1)
}
  0x22   :  { %34 = dma.hbm_to_vmem [thread:$0]  %s401_s1, 1024, %s29_s27, [#allocation7], %s333_s22, %s333_s22, %s334_s23  }
  0x23   :  { %326 = dma.done.wait [#allocation4], 128  }
  0x24   :  { %327 = vsyncadd [#allocation4], 4294967168 }
  0x25   :  { %328 = dma.done.wait [#allocation7], 1024  }
  0x26   :  { %329 = vsyncadd [#allocation7], 4294966272  ;;  %v336_v0 = vmov 0.0   ;;  %vm337_vm0 = vmmov 0   ;;  %v251_v1 = vld [vmem:[#allocation6] sm:$0xff]   ;;  %v252_v2 = vld [vmem:[#allocation6 + $0x8] sm:$0xff]  }
  0x27   :  { %222 = vmatprep.subr.bf16.mxu0 %v336_v0  ;;  %238 = vmatprep.mubr.msk.bf16.mxu0 %vm337_vm0, %v336_v0  ;;  %v253_v3 = vld [vmem:[#allocation6 + $0x10] sm:$0xff]   ;;  %v254_v4 = vld [vmem:[#allocation6 + $0x18] sm:$0xff]   ;;  %v255_v5 = vld [vmem:[#allocation6 + $0x20] sm:$0xff]   ;;  %s338_s11 = smov [#allocation8]  }
  0x28   :  { %223 = vmatpush3.bf16.msra.mxu0 %v251_v1  ;;  %v256_v6 = vld [vmem:[#allocation6 + $0x28] sm:$0xff]   ;;  %v257_v7 = vld [vmem:[#allocation6 + $0x30] sm:$0xff]   ;;  %v258_v8 = vld [vmem:[#allocation6 + $0x38] sm:$0xff]   ;;  %s190_s12 = sshll.u32 %s338_s11, 4  ;;  %s191_s12 = int_to_ptr.vmem [resolvable:$true] %s190_s12 }
  0x29   :  { %224 = vmatprep.subr.bf16.mxu0 %v336_v0  ;;  %v259_v9 = vld [vmem:[#allocation3] sm:$0xff]   ;;  %s304_s13 = scalar_lea.vmem %s191_s12, 256  ;;  %p309_p3 = scmp.lt.s32.totalorder %s191_s12, %s191_s12 }
  0x2a   :  { %v212_v10 = vld [vmem:[%s402_s2] ss:$0 sm:$0xff]  ;;  %p305_p2 = scmp.ne.s32.totalorder %s191_s12, %s304_s13  ;;  %p310_p4 = scmp.lt.s32.totalorder %s304_s13, %s304_s13 }
  0x2c   :  { %225 = vmatpush3.bf16.msra.mxu0 %v252_v2  ;;  %p311_p5 = por %p310_p4, %p309_p3 }
  0x2d   :  { %226 = vmatprep.subr.bf16.mxu0 %v336_v0 }
  0x2e   :  { %p312_p6 = pnand %p311_p5, %p305_p2 }
  0x30   :  { %227 = vmatpush3.bf16.msra.mxu0 %v253_v3 }
  0x31   :  { %228 = vmatprep.subr.bf16.mxu0 %v336_v0 }
  0x34   :  { %229 = vmatpush3.bf16.msra.mxu0 %v254_v4 }
  0x35   :  { %230 = vmatprep.subr.bf16.mxu0 %v336_v0 }
  0x38   :  { %231 = vmatpush3.bf16.msra.mxu0 %v255_v5 }
  0x39   :  { %232 = vmatprep.subr.bf16.mxu0 %v336_v0 }
  0x3c   :  { %233 = vmatpush3.bf16.msra.mxu0 %v256_v6 }
  0x3d   :  { %234 = vmatprep.subr.bf16.mxu0 %v336_v0 }
  0x40   :  { %235 = vmatpush3.bf16.msra.mxu0 %v257_v7 }
  0x41   :  { %236 = vmatprep.subr.bf16.mxu0 %v336_v0 }
  0x44   :  { %237 = vmatpush3.bf16.msra.mxu0 %v258_v8 }
  0x47   :  { %239 = vmatmul.mubr.bf16.vlgmr.msra.gmra.mrb[0].mxu0 %v259_v9 }
 0x11a   :  { %v158_v11 = vpop.f32.mrb[0].mxu0 }
 0x11b   :  { %v181_v12 = vadd.f32 %v212_v10, %v158_v11  ;;  %v240_v13 = vpop.f32.mrb[1].mxu0 }
 0x11c   :  { %v161_v14 = vpop.f32.mrb[2].mxu0 }
 0x11d   :  { %183 = vst [vmem:[#allocation8] sm:$0xff] %v181_v12  ;;  %v182_v15 = vadd.f32 %v212_v10, %v161_v14  ;;  %v241_v16 = vpop.f32.mrb[3].mxu0 }
 0x11f   :  { %184 = vst [vmem:[#allocation8 + $0x8] sm:$0xff] %v182_v15 }
 0x120   :  { %315 = shalt.err (!%p312_p6)
}
 0x121   :  { %s316_s15 = scalar_lea.hbm %s403_s3, 256 }
 0x122   :  { %p317_p7 = scmp.ne.s32.totalorder %s403_s3, %s316_s15  ;;  %p320_p8 = scmp.lt.u32.totalorder %s316_s15, %s403_s3 }
 0x124   :  { %p322_p9 = pnand %p320_p8, %p317_p7 }
 0x126   :  { %325 = shalt.err (!%p322_p9)
}
 0x127   :  { %s339_s20 = smov 128   ;;  %s340_s21 = smov 8  }
 0x128   :  { %196 = dma.vmem_to_hbm [thread:$0]  %s191_s12, 256, %s403_s3, [#allocation5], %s339_s20, %s339_s20, %s340_s21  }
 0x129   :  { %330 = dma.done.wait [#allocation5], 256  }
 0x12a   :  { %331 = vsyncadd [#allocation5], 4294967040 }
 0x12b   :  { %200 = vsyncpa [#allocation4], 1 }
 0x12c   :  { %201 = vsyncpa [#allocation7], 1 }
 0x12d   :  { %202 = vsyncpa [#allocation5], 1 }

</bundles_post_ra>
